<compile_context>
chip_gen: v6e
topology: v6e:2x2x1
jax: 0.10.0
libtpu: 0.0.40
codegen_flags: <defaults>
</compile_context>

<pallas_src>
import jax
import jax.numpy as jnp
from jax import lax
from jax.experimental import pallas as pl
from jax.experimental.pallas import tpu as pltpu

# ---------------------------------------------------------------------------
# Problem sizes (small, consistent with the module)
# ---------------------------------------------------------------------------
N, H, W = 2, 8, 8          # batch, spatial
C_IN, C_MID = 3, 6         # conv: 3 -> 6, then 6 -> 6 -> 6
K = 3                      # 3x3 conv, no padding, stride 1
HO, WO = H - K + 1, W - K + 1
M = N * HO * WO            # flattened output rows (72, multiple of 8)
KKC = K * K * C_IN         # im2col contraction depth (27)
EPS = 1e-5

# Padded (lane/sublane aligned) kernel-side sizes.
K_PAD = 128                # contraction dim: 27 (+1 ones column) -> 128
C_PAD = 128                # output channels: 6 -> 128 (lane-dense stores)


# ---------------------------------------------------------------------------
# Kernel: a single MXU matmul.  Bias is folded into the weight matrix via an
# augmented ones-column in the patch matrix, so no extra VPU work is needed.
# ---------------------------------------------------------------------------
def model_kernel(p_ref,   # (M, K_PAD)      im2col patches (+ ones column, zero padded)
                 w_ref,   # (K_PAD, C_PAD)  folded weights (+ bias row, zero padded)
                 o_ref):  # (M, C_PAD)      flattened padded output
    o_ref[...] = jnp.dot(
        p_ref[...], w_ref[...], preferred_element_type=jnp.float32
    ).astype(o_ref.dtype)


def model_forward_pallas(x_nhwc, params):
    (w0, s0, b0, w1, s1, b1, w2, s2, b2) = params

    # --- fold the affine post-conv chain into the conv weights (exact, f32) --
    # y = ((conv(x,w0) * s0 + b0) @ w1 * s1 + b1) @ w2 * s2 + b2
    w_eff = w0 * s0.reshape(1, 1, 1, C_MID)                      # (K,K,Ci,Co)
    w_eff = jnp.einsum("hwic,cd->hwid", w_eff, w1) * s1.reshape(1, 1, 1, C_MID)
    w_eff = jnp.einsum("hwic,cd->hwid", w_eff, w2) * s2.reshape(1, 1, 1, C_MID)
    w_eff_2d = w_eff.reshape(KKC, C_MID)                         # (27, 6)

    b_eff = (b0 @ w1) * s1 + b1                                  # (1, 6)
    b_eff = (b_eff @ w2) * s2 + b2                               # (1, 6)

    # --- im2col in the wrapper: (N*HO*WO, K*K*C_IN), ordered (kh, kw, ci) ----
    patches = jnp.stack(
        [x_nhwc[:, di:di + HO, dj:dj + WO, :]
         for di in range(K) for dj in range(K)],
        axis=3,                                                  # (N,HO,WO,9,Ci)
    ).reshape(M, KKC)

    # Augment with a ones-column (bias) and zero-pad to aligned tiles.
    ones_col = jnp.ones((M, 1), jnp.float32)
    patches_aug = jnp.concatenate([patches, ones_col], axis=1)   # (M, 28)
    patches_pad = jnp.pad(patches_aug,
                          ((0, 0), (0, K_PAD - (KKC + 1))))      # (M, 128)

    w_aug = jnp.concatenate([w_eff_2d, b_eff], axis=0)           # (28, 6)
    w_pad = jnp.pad(w_aug,
                    ((0, K_PAD - (KKC + 1)), (0, C_PAD - C_MID)))  # (128, 128)

    out_pad = pl.pallas_call(
        model_kernel,
        out_shape=jax.ShapeDtypeStruct((M, C_PAD), jnp.float32),
        grid_spec=pltpu.PrefetchScalarGridSpec(
            num_scalar_prefetch=0,
            grid=(1,),
            in_specs=[
                pl.BlockSpec((M, K_PAD), lambda i: (0, 0)),
                pl.BlockSpec((K_PAD, C_PAD), lambda i: (0, 0)),
            ],
            out_specs=pl.BlockSpec((M, C_PAD), lambda i: (0, 0)),
        ),
        compiler_params=pltpu.CompilerParams(
            dimension_semantics=("arbitrary",)),
    )(patches_pad, w_pad)

    return out_pad[:, :C_MID].reshape(N, HO, WO, C_MID)


# ---------------------------------------------------------------------------
# Deterministic parameter construction + BN folding
# ---------------------------------------------------------------------------
def fold_bn(gamma, beta, mean, var, eps=EPS):
    scale = gamma / jnp.sqrt(var + eps)
    shift = beta - mean * scale
    return scale.reshape(1, -1), shift.reshape(1, -1)


def make_params(key):
    ks = jax.random.split(key, 12)
    # conv 3x3 weights, built directly in HWIO layout (kh, kw, cin, cout)
    w0 = jax.random.normal(ks[0], (K, K, C_IN, C_MID), jnp.float32) * 0.2
    # BN params (gamma, beta, running_mean, running_var)
    g0 = 1.0 + 0.1 * jax.random.normal(ks[1], (C_MID,), jnp.float32)
    be0 = 0.1 * jax.random.normal(ks[2], (C_MID,), jnp.float32)
    m0 = 0.05 * jax.random.normal(ks[3], (C_MID,), jnp.float32)
    v0 = jax.random.uniform(ks[4], (C_MID,), jnp.float32, 0.5, 1.5)
    # ConvBlock 1: 1x1 conv (cin, cout) + BN
    w1 = jax.random.normal(ks[5], (C_MID, C_MID), jnp.float32) * 0.3
    g1 = 1.0 + 0.1 * jax.random.normal(ks[6], (C_MID,), jnp.float32)
    be1 = 0.1 * jax.random.normal(ks[7], (C_MID,), jnp.float32)
    m1 = 0.05 * jax.random.normal(ks[8], (C_MID,), jnp.float32)
    v1 = jax.random.uniform(ks[9], (C_MID,), jnp.float32, 0.5, 1.5)
    # ConvBlock 2
    w2 = jax.random.normal(ks[10], (C_MID, C_MID), jnp.float32) * 0.3
    g2 = 1.0 + 0.1 * jax.random.normal(ks[11], (C_MID,), jnp.float32)
    be2 = jnp.linspace(-0.1, 0.1, C_MID, dtype=jnp.float32)
    m2 = jnp.linspace(-0.05, 0.05, C_MID, dtype=jnp.float32)
    v2 = jnp.linspace(0.8, 1.2, C_MID, dtype=jnp.float32)

    s0, b0 = fold_bn(g0, be0, m0, v0)
    s1, b1 = fold_bn(g1, be1, m1, v1)
    s2, b2 = fold_bn(g2, be2, m2, v2)
    return (w0, s0, b0, w1, s1, b1, w2, s2, b2)


# ---------------------------------------------------------------------------
# Pure-JAX reference (NHWC) for a correctness check -- uses the UNfolded
# parameters so the host-side weight folding is verified too.
# ---------------------------------------------------------------------------
def model_forward_ref(x_nhwc, params):
    (w0, s0, b0, w1, s1, b1, w2, s2, b2) = params
    dn = lax.conv_dimension_numbers(x_nhwc.shape, w0.shape,
                                    ("NHWC", "HWIO", "NHWC"))
    y = lax.conv_general_dilated(x_nhwc, w0, (1, 1), "VALID",
                                 dimension_numbers=dn)
    y = y * s0.reshape(1, 1, 1, -1) + b0.reshape(1, 1, 1, -1)
    y = jnp.einsum("nhwc,cd->nhwd", y, w1)
    y = y * s1.reshape(1, 1, 1, -1) + b1.reshape(1, 1, 1, -1)
    y = jnp.einsum("nhwc,cd->nhwd", y, w2)
    y = y * s2.reshape(1, 1, 1, -1) + b2.reshape(1, 1, 1, -1)
    return y


if __name__ == "__main__":
    key = jax.random.PRNGKey(0)
    k_x, k_p = jax.random.split(key)

    # PyTorch-style NCHW input, transposed to NHWC for the kernel
    x_nchw = jax.random.normal(k_x, (N, C_IN, H, W), jnp.float32)
    x_nhwc = jnp.transpose(x_nchw, (0, 2, 3, 1))

    params = make_params(k_p)

    out = model_forward_pallas(x_nhwc, params)
    out = jax.block_until_ready(out)

    ref = model_forward_ref(x_nhwc, params)
    assert out.shape == (N, HO, WO, C_MID)
    assert jnp.allclose(out, ref, atol=1e-4, rtol=1e-4), "mismatch vs reference"

    print("KERNEL_OK")
</pallas_src>

<mosaic_0001>
module attributes {stable_mosaic.version = 11 : i64} {
  func.func @model_kernel(%arg0: i32, %arg1: memref<72x128xf32, #tpu.memory_space<vmem>>, %arg2: memref<128x128xf32, #tpu.memory_space<vmem>>, %arg3: memref<72x128xf32, #tpu.memory_space<vmem>>) attributes {dimension_semantics = [#tpu.dimension_semantics<arbitrary>], iteration_bounds = array<i64: 1>, scalar_prefetch = 0 : i64, scratch_operands = 0 : i64, tpu.core_type = #tpu.core_type<tc>, window_params = [{pipeline_mode = #tpu.pipeline_mode<synchronous>, transform_indices = @transform_0, window_bounds = array<i64: 72, 128>}, {pipeline_mode = #tpu.pipeline_mode<synchronous>, transform_indices = @transform_1, window_bounds = array<i64: 128, 128>}, {pipeline_mode = #tpu.pipeline_mode<synchronous>, transform_indices = @transform_2, window_bounds = array<i64: 72, 128>}]} {
    %c0 = arith.constant 0 : index
    %c0_0 = arith.constant 0 : index
    %0 = vector.load %arg1[%c0, %c0_0] : memref<72x128xf32, #tpu.memory_space<vmem>>, vector<72x128xf32>
    %c0_1 = arith.constant 0 : index
    %c0_2 = arith.constant 0 : index
    %1 = vector.load %arg2[%c0_1, %c0_2] : memref<128x128xf32, #tpu.memory_space<vmem>>, vector<128x128xf32>
    %cst = arith.constant dense<0.000000e+00> : vector<72x128xf32>
    %2 = tpu.matmul %0, %1, %cst {dimension_numbers = #tpu.dot_dimension_numbers<[1], [0], [0], [1], [0, 0, 1, 1], [], []>} : vector<72x128xf32>, vector<128x128xf32>, vector<72x128xf32> -> vector<72x128xf32>
    %c0_3 = arith.constant 0 : index
    %c0_4 = arith.constant 0 : index
    %3 = vector.load %arg3[%c0_3, %c0_4] : memref<72x128xf32, #tpu.memory_space<vmem>>, vector<72x128xf32>
    tpu.vector_store %arg3[%c0_3, %c0_4], %2 {strides = array<i32>} : memref<72x128xf32, #tpu.memory_space<vmem>>, vector<72x128xf32>,
    return
  }
  func.func @transform_0(%arg0: i32) -> (i32, i32) {
    %c0_i32 = arith.constant 0 : i32
    %c0_i32_0 = arith.constant 0 : i32
    %c0_i32_1 = arith.constant 0 : i32
    return %c0_i32, %c0_i32_0 : i32, i32
  }
  func.func @transform_1(%arg0: i32) -> (i32, i32) {
    %c0_i32 = arith.constant 0 : i32
    %c0_i32_0 = arith.constant 0 : i32
    %c0_i32_1 = arith.constant 0 : i32
    return %c0_i32, %c0_i32_0 : i32, i32
  }
  func.func @transform_2(%arg0: i32) -> (i32, i32) {
    %c0_i32 = arith.constant 0 : i32
    %c0_i32_0 = arith.constant 0 : i32
    %c0_i32_1 = arith.constant 0 : i32
    return %c0_i32, %c0_i32_0 : i32, i32
  }
}

</mosaic_0001>

<bundles_post_ra>
// kernel: tpu_custom_call.1
= control target key start
LH: loop header
LB: loop body
LE: loop exit
PB: predicated region body
PF: predicated region fallthrough
CT: control target
= control target key end

     0   :  { %7 = vsyncpa [#allocation3], 0  ;;  %s481_s0 = inlined_call_operand.hbm [shape: f32[72,128], index: 0, kind: input, shape index: {}]   ;;  %s482_s1 = inlined_call_operand.hbm [shape: f32[128,128], index: 1, kind: input, shape index: {}]   ;;  %s483_s2 = inlined_call_operand.hbm [shape: f32[72,128], index: 2, kind: output, shape index: {}]  }
   0x1   :  { %8 = vsyncpa [#allocation6], 0 }
   0x2   :  { %9 = vsyncpa [#allocation4], 0  ;;  %s391_s9 = smov [#allocation2]  }
   0x3   :  { %s15_s10 = sshll.u32 %s391_s9, 4  ;;  %s16_s10 = int_to_ptr.vmem [resolvable:$true] %s15_s10 }
   0x4   :  { %s333_s11 = scalar_lea.vmem %s16_s10, 1152  ;;  %p338_p1 = scmp.lt.s32.totalorder %s16_s10, %s16_s10 }
   0x5   :  { %p334_p0 = scmp.ne.s32.totalorder %s16_s10, %s333_s11  ;;  %p339_p2 = scmp.lt.s32.totalorder %s333_s11, %s333_s11 }
   0x7   :  { %p340_p3 = por %p339_p2, %p338_p1 }
   0x9   :  { %p341_p4 = pnand %p340_p3, %p334_p0 }
   0xb   :  { %344 = shalt.err (!%p341_p4)
}
   0xc   :  { %s392_s12 = smov 128   ;;  %s393_s13 = smov 8  }
   0xd   :  { %21 = dma.hbm_to_vmem [thread:$0]  %s481_s0, 1152, %s16_s10, [#allocation3], %s392_s12, %s392_s12, %s393_s13  }
   0xe   :  { %s394_s16 = smov [#allocation5]  }
   0xf   :  { %s27_s17 = sshll.u32 %s394_s16, 4  ;;  %s28_s17 = int_to_ptr.vmem [resolvable:$true] %s27_s17 }
  0x10   :  { %s353_s18 = scalar_lea.vmem %s28_s17, 2048  ;;  %p358_p6 = scmp.lt.s32.totalorder %s28_s17, %s28_s17 }
  0x11   :  { %p354_p5 = scmp.ne.s32.totalorder %s28_s17, %s353_s18  ;;  %p359_p7 = scmp.lt.s32.totalorder %s353_s18, %s353_s18 }
  0x13   :  { %p360_p8 = por %p359_p7, %p358_p6 }
  0x15   :  { %p361_p9 = pnand %p360_p8, %p354_p5 }
  0x17   :  { %364 = shalt.err (!%p361_p9)
}
  0x18   :  { %33 = dma.hbm_to_vmem [thread:$0]  %s482_s1, 2048, %s28_s17, [#allocation6], %s392_s12, %s392_s12, %s393_s13  }
  0x19   :  { %385 = dma.done.wait [#allocation3], 1152  }
  0x1a   :  { %386 = vsyncadd [#allocation3], 4294966144 }
  0x1b   :  { %387 = dma.done.wait [#allocation6], 2048  }
  0x1c   :  { %388 = vsyncadd [#allocation6], 4294965248  ;;  %v395_v0 = vmov 0.0   ;;  %vm396_vm0 = vmmov 0   ;;  %v64_v1 = vld [vmem:[#allocation5 + $0x78] sm:$0xff]  ;;  %v63_v2 = vld [vmem:[#allocation5 + $0x70] sm:$0xff] }
  0x1d   :  { %227 = vmatprep.subr.mxu0 %v395_v0  ;;  %286 = vmatprep.subr.mxu1 %v395_v0  ;;  %v62_v3 = vld [vmem:[#allocation5 + $0x68] sm:$0xff]  ;;  %v61_v4 = vld [vmem:[#allocation5 + $0x60] sm:$0xff]  ;;  %v60_v5 = vld [vmem:[#allocation5 + $0x58] sm:$0xff]  ;;  %s397_s0 = smov [#allocation7]  }
  0x1e   :  { %259 = vmatprep.mubr.msk.f32.mxu0 %vm396_vm0, %v395_v0  ;;  %274 = vmatprep.mubr.msk.f32.mxu1 %vm396_vm0, %v395_v0  ;;  %v59_v6 = vld [vmem:[#allocation5 + $0x50] sm:$0xff]  ;;  %v58_v7 = vld [vmem:[#allocation5 + $0x48] sm:$0xff]  ;;  %v57_v8 = vld [vmem:[#allocation5 + $0x40] sm:$0xff]  ;;  %s189_s1 = sshll.u32 %s397_s0, 4  ;;  %s190_s1 = int_to_ptr.vmem [resolvable:$true] %s189_s1 }
  0x1f   :  { %228 = vmatpush3.msra.mxu0 %v64_v1  ;;  %302 = vmatpush3.msra.mxu1 %v64_v1  ;;  %v56_v9 = vld [vmem:[#allocation5 + $0x38] sm:$0xff]  ;;  %v55_v10 = vld [vmem:[#allocation5 + $0x30] sm:$0xff]  ;;  %v54_v11 = vld [vmem:[#allocation5 + $0x28] sm:$0xff]  ;;  %s365_s21 = scalar_lea.vmem %s190_s1, 1152  ;;  %p370_p11 = scmp.lt.s32.totalorder %s190_s1, %s190_s1 }
  0x20   :  { %229 = vmatprep.subr.mxu0 %v395_v0  ;;  %287 = vmatprep.subr.mxu1 %v395_v0  ;;  %v53_v12 = vld [vmem:[#allocation5 + $0x20] sm:$0xff]  ;;  %v52_v13 = vld [vmem:[#allocation5 + $0x18] sm:$0xff]  ;;  %v51_v14 = vld [vmem:[#allocation5 + $0x10] sm:$0xff]  ;;  %p366_p10 = scmp.ne.s32.totalorder %s190_s1, %s365_s21  ;;  %p371_p12 = scmp.lt.s32.totalorder %s365_s21, %s365_s21 }
  0x21   :  { %230 = vmatpush3.msra.mxu0 %v63_v2  ;;  %303 = vmatpush3.msra.mxu1 %v63_v2  ;;  %v50_v15 = vld [vmem:[#allocation5 + $0x8] sm:$0xff]  ;;  %v49_v16 = vld [vmem:[#allocation5] sm:$0xff]  ;;  %v40_v17 = vld [vmem:[#allocation2] sm:$0xff] }
  0x22   :  { %231 = vmatprep.subr.mxu0 %v395_v0  ;;  %288 = vmatprep.subr.mxu1 %v395_v0  ;;  %v45_v18 = vld [vmem:[#allocation2 + $0x28] sm:$0xff]  ;;  %v46_v20 = vld [vmem:[#allocation2 + $0x30] sm:$0xff]  ;;  %v47_v22 = vld [vmem:[#allocation2 + $0x38] sm:$0xff]  ;;  %p372_p13 = por %p371_p12, %p370_p11 }
  0x23   :  { %232 = vmatpush3.msra.mxu0 %v62_v3  ;;  %304 = vmatpush3.msra.mxu1 %v62_v3  ;;  %v41_v19 = vld [vmem:[#allocation2 + $0x8] sm:$0xff]  ;;  %v42_v21 = vld [vmem:[#allocation2 + $0x10] sm:$0xff]  ;;  %v43_v23 = vld [vmem:[#allocation2 + $0x18] sm:$0xff] }
  0x24   :  { %233 = vmatprep.subr.mxu0 %v395_v0  ;;  %289 = vmatprep.subr.mxu1 %v395_v0  ;;  %v48_v24 = vld [vmem:[#allocation2 + $0x40] sm:$0xff]  ;;  %p373_p0 = pnand %p372_p13, %p366_p10 }
  0x25   :  { %234 = vmatpush3.msra.mxu0 %v61_v4  ;;  %305 = vmatpush3.msra.mxu1 %v61_v4  ;;  %v44_v25 = vld [vmem:[#allocation2 + $0x20] sm:$0xff] }
  0x26   :  { %235 = vmatprep.subr.mxu0 %v395_v0  ;;  %290 = vmatprep.subr.mxu1 %v395_v0 }
  0x27   :  { %236 = vmatpush3.msra.mxu0 %v60_v5  ;;  %306 = vmatpush3.msra.mxu1 %v60_v5 }
  0x28   :  { %237 = vmatprep.subr.mxu0 %v395_v0  ;;  %291 = vmatprep.subr.mxu1 %v395_v0 }
  0x29   :  { %238 = vmatpush3.msra.mxu0 %v59_v6  ;;  %307 = vmatpush3.msra.mxu1 %v59_v6 }
  0x2a   :  { %239 = vmatprep.subr.mxu0 %v395_v0  ;;  %292 = vmatprep.subr.mxu1 %v395_v0 }
  0x2b   :  { %240 = vmatpush3.msra.mxu0 %v58_v7  ;;  %308 = vmatpush3.msra.mxu1 %v58_v7 }
  0x2c   :  { %241 = vmatprep.subr.mxu0 %v395_v0  ;;  %293 = vmatprep.subr.mxu1 %v395_v0 }
  0x2d   :  { %242 = vmatpush3.msra.mxu0 %v57_v8  ;;  %309 = vmatpush3.msra.mxu1 %v57_v8 }
  0x2e   :  { %243 = vmatprep.subr.mxu0 %v395_v0  ;;  %294 = vmatprep.subr.mxu1 %v395_v0 }
  0x2f   :  { %244 = vmatpush3.msra.mxu0 %v56_v9  ;;  %310 = vmatpush3.msra.mxu1 %v56_v9 }
  0x30   :  { %245 = vmatprep.subr.mxu0 %v395_v0  ;;  %295 = vmatprep.subr.mxu1 %v395_v0 }
  0x31   :  { %246 = vmatpush3.msra.mxu0 %v55_v10  ;;  %311 = vmatpush3.msra.mxu1 %v55_v10 }
  0x32   :  { %247 = vmatprep.subr.mxu0 %v395_v0  ;;  %296 = vmatprep.subr.mxu1 %v395_v0 }
  0x33   :  { %248 = vmatpush3.msra.mxu0 %v54_v11  ;;  %312 = vmatpush3.msra.mxu1 %v54_v11 }
  0x34   :  { %249 = vmatprep.subr.mxu0 %v395_v0  ;;  %297 = vmatprep.subr.mxu1 %v395_v0 }
  0x35   :  { %250 = vmatpush3.msra.mxu0 %v53_v12  ;;  %313 = vmatpush3.msra.mxu1 %v53_v12 }
  0x36   :  { %251 = vmatprep.subr.mxu0 %v395_v0  ;;  %298 = vmatprep.subr.mxu1 %v395_v0 }
  0x37   :  { %252 = vmatpush3.msra.mxu0 %v52_v13  ;;  %314 = vmatpush3.msra.mxu1 %v52_v13 }
  0x38   :  { %253 = vmatprep.subr.mxu0 %v395_v0  ;;  %299 = vmatprep.subr.mxu1 %v395_v0 }
  0x39   :  { %254 = vmatpush3.msra.mxu0 %v51_v14  ;;  %315 = vmatpush3.msra.mxu1 %v51_v14 }
  0x3a   :  { %255 = vmatprep.subr.mxu0 %v395_v0  ;;  %300 = vmatprep.subr.mxu1 %v395_v0 }
  0x3b   :  { %256 = vmatpush3.msra.mxu0 %v50_v15  ;;  %316 = vmatpush3.msra.mxu1 %v50_v15 }
  0x3c   :  { %257 = vmatprep.subr.mxu0 %v395_v0  ;;  %301 = vmatprep.subr.mxu1 %v395_v0 }
  0x3d   :  { %258 = vmatpush3.msra.mxu0 %v49_v16  ;;  %317 = vmatpush3.msra.mxu1 %v49_v16 }
  0x3e   :  { %260 = vmatmul.mubr.f32.vlgmr.msra.gmra.mxu0 %v40_v17  ;;  %275 = vmatmul.mubr.f32.vlgmr.msra.gmra.mxu1 %v45_v18 }
  0x3f   :  { %262 = vmatprep.mubr.msk.f32.mxu0 %vm396_vm0, %v395_v0  ;;  %277 = vmatprep.mubr.msk.f32.mxu1 %vm396_vm0, %v395_v0 }
  0x42   :  { %263 = vmatmul.mubr.f32.gmra.mxu0 %v41_v19  ;;  %278 = vmatmul.mubr.f32.gmra.mxu1 %v46_v20 }
  0x43   :  { %265 = vmatprep.mubr.msk.f32.mxu0 %vm396_vm0, %v395_v0  ;;  %280 = vmatprep.mubr.msk.f32.mxu1 %vm396_vm0, %v395_v0 }
  0x46   :  { %266 = vmatmul.mubr.f32.gmra.mxu0 %v42_v21  ;;  %281 = vmatmul.mubr.f32.gmra.mxu1 %v47_v22 }
  0x47   :  { %268 = vmatprep.mubr.msk.f32.mxu0 %vm396_vm0, %v395_v0  ;;  %283 = vmatprep.mubr.msk.f32.mxu1 %vm396_vm0, %v395_v0 }
  0x4a   :  { %269 = vmatmul.mubr.f32.gmra.mxu0 %v43_v23  ;;  %284 = vmatmul.mubr.f32.gmra.mxu1 %v48_v24 }
  0x4b   :  { %271 = vmatprep.mubr.msk.f32.mxu0 %vm396_vm0, %v395_v0 }
  0x4e   :  { %272 = vmatmul.mubr.f32.gmra.mxu0 %v44_v25 }
  0xfe   :  { %v131_v26 = vpop.f32.mrf.mxu0  ;;  %v156_v27 = vpop.f32.mrf.mxu1 }
  0xff   :  { %175 = vst [vmem:[#allocation7] sm:$0xff] %v131_v26  ;;  %180 = vst [vmem:[#allocation7 + $0x28] sm:$0xff] %v156_v27 }
 0x100   :  { %v261_v28 = vpop.f32.mrf.mxu0  ;;  %v276_v29 = vpop.f32.mrf.mxu1 }
 0x102   :  { %v136_v30 = vpop.f32.mrf.mxu0  ;;  %v161_v31 = vpop.f32.mrf.mxu1 }
 0x103   :  { %176 = vst [vmem:[#allocation7 + $0x8] sm:$0xff] %v136_v30  ;;  %181 = vst [vmem:[#allocation7 + $0x30] sm:$0xff] %v161_v31 }
 0x104   :  { %v264_v32 = vpop.f32.mrf.mxu0  ;;  %v279_v33 = vpop.f32.mrf.mxu1 }
 0x106   :  { %v141_v34 = vpop.f32.mrf.mxu0  ;;  %v166_v35 = vpop.f32.mrf.mxu1 }
 0x107   :  { %177 = vst [vmem:[#allocation7 + $0x10] sm:$0xff] %v141_v34  ;;  %182 = vst [vmem:[#allocation7 + $0x38] sm:$0xff] %v166_v35 }
 0x108   :  { %v267_v36 = vpop.f32.mrf.mxu0  ;;  %v282_v37 = vpop.f32.mrf.mxu1 }
 0x10a   :  { %v146_v38 = vpop.f32.mrf.mxu0  ;;  %v171_v39 = vpop.f32.mrf.mxu1 }
 0x10b   :  { %178 = vst [vmem:[#allocation7 + $0x18] sm:$0xff] %v146_v38  ;;  %183 = vst [vmem:[#allocation7 + $0x40] sm:$0xff] %v171_v39 }
 0x10c   :  { %v270_v40 = vpop.f32.mrf.mxu0  ;;  %v285_v41 = vpop.f32.mrf.mxu1 }
 0x10e   :  { %v151_v42 = vpop.f32.mrf.mxu0 }
 0x10f   :  { %179 = vst [vmem:[#allocation7 + $0x20] sm:$0xff] %v151_v42 }
 0x110   :  { %v273_v43 = vpop.f32.mrf.mxu0 }
 0x111   :  { %376 = shalt.err (!%p373_p0)
}
 0x112   :  { %195 = dma.vmem_to_hbm [thread:$0]  %s190_s1, 1152, %s483_s2, [#allocation4], %s392_s12, %s392_s12, %s393_s13  }
 0x113   :  { %389 = dma.done.wait [#allocation4], 1152  }
 0x114   :  { %390 = vsyncadd [#allocation4], 4294966144 }
 0x115   :  { %199 = vsyncpa [#allocation3], 1 }
 0x116   :  { %200 = vsyncpa [#allocation6], 1 }
 0x117   :  { %201 = vsyncpa [#allocation4], 1 }

</bundles_post_ra>
